<compile_context>
chip_gen: v7x
topology: tpu7x:2x2x1
jax: 0.10.0
libtpu: 0.0.40
codegen_flags: <defaults>
</compile_context>

<pallas_src>
import jax
import jax.numpy as jnp
from jax import lax
from jax.experimental import pallas as pl
from jax.experimental.pallas import tpu as pltpu

_W = 128                   # lane width: keep 128 (MXU/lane-matched on v5e/v6e/v7x)
_MAX_RESIDENT_ROWS = 512   # Path A covers up to 512*128 = 65536 elements fully in VMEM
_STREAM_TILE_ROWS = 512    # row-block height for the streaming path


def _upper_tri(width):
    """(width, width) f32 with ones on/above the diagonal (inclusive lane cumsum matrix)."""
    r = lax.broadcasted_iota(jnp.int32, (width, width), 0)
    c = lax.broadcasted_iota(jnp.int32, (width, width), 1)
    return (r <= c).astype(jnp.float32)


def _strict_lower(size):
    """(size, size) f32 with ones strictly below the diagonal (exclusive row-prefix matrix)."""
    r = lax.broadcasted_iota(jnp.int32, (size, size), 0)
    c = lax.broadcasted_iota(jnp.int32, (size, size), 1)
    return (c < r).astype(jnp.float32)


def _make_resident_kernel(rows, width, n_valid):
    """Single-shot kernel: whole (rows, W) problem resident in VMEM, norm computed in-kernel."""

    def kernel(risk_ref, cens_ref, out_ref):
        risk = risk_ref[...]                                       # (rows, W), zero-padded
        cens = cens_ref[...]                                       # (rows, W), zero-padded

        # L2 norm over dim 0 (single column). Padding is zero -> contributes nothing.
        ssq = jnp.broadcast_to(jnp.sum(risk * risk), (1, 1))
        inv_norm = 1.0 / jnp.maximum(jnp.sqrt(ssq), 1e-12)         # (1,1), F.normalize eps
        riskmax = risk * inv_norm                                  # (rows, W)

        # Mask the zero-padded tail before exp (exp(0)=1 would corrupt the cumsum).
        rid = lax.broadcasted_iota(jnp.int32, (rows, width), 0)
        lid = lax.broadcasted_iota(jnp.int32, (rows, width), 1)
        valid = ((rid * width + lid) < n_valid).astype(jnp.float32)
        exp_r = jnp.exp(riskmax) * valid                           # padded -> 0

        # Inclusive lane cumsum per row (MXU) + exclusive row prefix (tiny MXU matmul).
        cums_lane = jnp.dot(exp_r, _upper_tri(width),
                            preferred_element_type=jnp.float32)    # (rows, W)
        row_tot = jnp.sum(exp_r, axis=1, keepdims=True)            # (rows, 1)
        row_excl = jnp.dot(_strict_lower(rows), row_tot,
                           preferred_element_type=jnp.float32)     # (rows, 1)

        log_risk = jnp.log(cums_lane + row_excl)                   # > 0 at every slot
        censored = (riskmax - log_risk) * cens                     # padded cens == 0

        num = jnp.broadcast_to(jnp.sum(censored), (1, 1))
        cnt = jnp.broadcast_to(jnp.sum((cens != 0.0).astype(jnp.float32)), (1, 1))
        # Zero events -> inf/nan division, matching the PyTorch reference.
        out_ref[...] = -(num / cnt)

    return kernel


def _make_streaming_kernel(tile_rows, width, n_valid):
    """Grid-over-row-blocks kernel with a sequential cumulative-exp carry."""

    def kernel(invn_ref, risk_ref, cens_ref, out_ref,
               triu_ref, slow_ref, carry_ref, num_ref, cnt_ref):
        i = pl.program_id(0)

        @pl.when(i == 0)
        def _():
            # Loop-invariant constants built once into VMEM scratch; accumulators zeroed.
            triu_ref[...] = _upper_tri(width)
            slow_ref[...] = _strict_lower(tile_rows)
            carry_ref[...] = jnp.zeros_like(carry_ref)
            num_ref[...] = jnp.zeros_like(num_ref)
            cnt_ref[...] = jnp.zeros_like(cnt_ref)

        inv_norm = invn_ref[0]                                     # f32 scalar from SMEM
        risk = risk_ref[...]                                       # (T, W)
        cens = cens_ref[...]                                       # (T, W), zero-padded
        riskmax = risk * inv_norm

        # Validity mask for the zero-padded tail.
        rid = lax.broadcasted_iota(jnp.int32, (tile_rows, width), 0)
        lid = lax.broadcasted_iota(jnp.int32, (tile_rows, width), 1)
        gidx = (i * tile_rows + rid) * width + lid                 # global flat index
        valid = (gidx < n_valid).astype(jnp.float32)
        exp_r = jnp.exp(riskmax) * valid

        # Blocked inclusive cumsum: lane cumsum (MXU) + row prefix inside block + carry.
        cums_lane = jnp.dot(exp_r, triu_ref[...],
                            preferred_element_type=jnp.float32)    # (T, W)
        row_tot = jnp.sum(exp_r, axis=1, keepdims=True)            # (T, 1)
        row_excl = jnp.dot(slow_ref[...], row_tot,
                           preferred_element_type=jnp.float32)     # (T, 1)

        carry_in = carry_ref[...]                                  # (1, 1)
        log_risk = jnp.log(cums_lane + row_excl + carry_in)
        censored = (riskmax - log_risk) * cens

        # Deferred reductions: pure elementwise accumulation per step (VPU only).
        num_ref[...] = num_ref[...] + censored
        cnt_ref[...] = cnt_ref[...] + (cens != 0.0).astype(jnp.float32)
        # Carry from already-reduced per-row totals (no full (T,W) cross-lane reduce).
        carry_ref[...] = carry_in + jnp.broadcast_to(jnp.sum(row_tot), (1, 1))

        @pl.when(i == pl.num_programs(0) - 1)
        def _():
            num = jnp.broadcast_to(jnp.sum(num_ref[...]), (1, 1))
            cnt = jnp.broadcast_to(jnp.sum(cnt_ref[...]), (1, 1))
            out_ref[...] = -(num / cnt)

    return kernel


@jax.jit
def coxph_loss_pallas(risk, censors):
    """risk: (N, 1) or (N,); censors: (N,) or (N, 1). Returns scalar f32 loss."""
    risk = jnp.asarray(risk, jnp.float32).reshape(-1)
    censors = jnp.asarray(censors, jnp.float32).reshape(-1)
    n = risk.shape[0]
    rows = pl.cdiv(n, _W)

    if rows <= _MAX_RESIDENT_ROWS:
        # ---- Path A: single-invocation, VMEM-resident, norm computed in-kernel ----
        padded_rows = max(8, pl.cdiv(rows, 8) * 8)
        pad = padded_rows * _W - n
        risk_p = jnp.pad(risk, (0, pad)).reshape(padded_rows, _W)
        cens_p = jnp.pad(censors, (0, pad)).reshape(padded_rows, _W)

        out = pl.pallas_call(
            _make_resident_kernel(padded_rows, _W, n),
            out_shape=jax.ShapeDtypeStruct((1, 1), jnp.float32),
            grid=(1,),
            in_specs=[
                pl.BlockSpec((padded_rows, _W), lambda i: (0, 0)),
                pl.BlockSpec((padded_rows, _W), lambda i: (0, 0)),
            ],
            out_specs=pl.BlockSpec((1, 1), lambda i: (0, 0)),
        )(risk_p, cens_p)
        return out[0, 0]

    # ---- Path B: streaming grid over 512-row blocks (large N) ----
    tile_rows = _STREAM_TILE_ROWS
    padded_rows = pl.cdiv(rows, tile_rows) * tile_rows
    pad = padded_rows * _W - n
    risk_p = jnp.pad(risk, (0, pad)).reshape(padded_rows, _W)
    cens_p = jnp.pad(censors, (0, pad)).reshape(padded_rows, _W)

    # Column L2 norm (F.normalize over dim 0), fed as an SMEM scalar.
    norm = jnp.sqrt(jnp.sum(risk * risk))
    inv_norm = (1.0 / jnp.maximum(norm, 1e-12)).reshape(1).astype(jnp.float32)

    out = pl.pallas_call(
        _make_streaming_kernel(tile_rows, _W, n),
        out_shape=jax.ShapeDtypeStruct((1, 1), jnp.float32),
        grid=(padded_rows // tile_rows,),
        in_specs=[
            pl.BlockSpec(memory_space=pltpu.MemorySpace.SMEM),     # inv_norm scalar
            pl.BlockSpec((tile_rows, _W), lambda i: (i, 0)),       # risk tile
            pl.BlockSpec((tile_rows, _W), lambda i: (i, 0)),       # censors tile
        ],
        out_specs=pl.BlockSpec((1, 1), lambda i: (0, 0)),
        scratch_shapes=[
            pltpu.VMEM((_W, _W), jnp.float32),                     # upper-triangular constant
            pltpu.VMEM((tile_rows, tile_rows), jnp.float32),       # strict-lower constant
            pltpu.VMEM((1, 1), jnp.float32),                       # running cumulative-exp carry
            pltpu.VMEM((tile_rows, _W), jnp.float32),              # numerator partials
            pltpu.VMEM((tile_rows, _W), jnp.float32),              # event-count partials
        ],
        compiler_params=pltpu.CompilerParams(
            dimension_semantics=("arbitrary",)),                   # sequential cumsum carry
    )(inv_norm, risk_p, cens_p)
    return out[0, 0]


def coxph_loss_ref(risk, censors):
    """Pure-JAX reference mirroring the PyTorch forward."""
    risk = jnp.asarray(risk, jnp.float32).reshape(-1, 1)
    censors = jnp.asarray(censors, jnp.float32).reshape(-1, 1)
    norm = jnp.sqrt(jnp.sum(risk * risk, axis=0, keepdims=True))
    riskmax = risk / jnp.maximum(norm, 1e-12)
    log_risk = jnp.log(jnp.cumsum(jnp.exp(riskmax), axis=0))
    uncensored = riskmax - log_risk
    censored = uncensored * censors
    return -jnp.sum(censored) / jnp.sum((censors != 0.0).astype(jnp.float32))


if __name__ == "__main__":
    # Small batch, matching the module's (N, 1) risk / (N,) censors layout.
    N = 8
    key = jax.random.PRNGKey(0)
    k_risk, k_cens = jax.random.split(key)
    risk = jax.random.normal(k_risk, (N, 1), dtype=jnp.float32)
    censors = (jax.random.uniform(k_cens, (N,)) > 0.5).astype(jnp.float32)
    censors = censors.at[0].set(1.0)  # guarantee >= 1 event (nonzero denominator)

    loss = coxph_loss_pallas(risk, censors)
    jax.block_until_ready(loss)
    ref = coxph_loss_ref(risk, censors)
    assert jnp.allclose(loss, ref, rtol=1e-5, atol=1e-5), (loss, ref)

    # Multi-row resident path: exercises the cross-row prefix matmul and the tail mask.
    N2 = 2500
    k2r, k2c = jax.random.split(jax.random.PRNGKey(1))
    risk2 = jax.random.normal(k2r, (N2, 1), dtype=jnp.float32)
    cens2 = (jax.random.uniform(k2c, (N2,)) > 0.5).astype(jnp.float32).at[0].set(1.0)

    loss2 = coxph_loss_pallas(risk2, cens2)
    jax.block_until_ready(loss2)
    ref2 = coxph_loss_ref(risk2, cens2)
    assert jnp.allclose(loss2, ref2, rtol=1e-4, atol=1e-4), (loss2, ref2)

    # Streaming path (N > 65536): exercises the grid, sequential carry and deferred reductions.
    N3 = 70000
    k3r, k3c = jax.random.split(jax.random.PRNGKey(2))
    risk3 = jax.random.normal(k3r, (N3, 1), dtype=jnp.float32)
    cens3 = (jax.random.uniform(k3c, (N3,)) > 0.5).astype(jnp.float32).at[0].set(1.0)

    loss3 = coxph_loss_pallas(risk3, cens3)
    jax.block_until_ready(loss3)
    ref3 = coxph_loss_ref(risk3, cens3)
    assert jnp.allclose(loss3, ref3, rtol=5e-4, atol=5e-4), (loss3, ref3)

    print("KERNEL_OK")
</pallas_src>

<mosaic_0001>
module attributes {stable_mosaic.version = 11 : i64} {
  func.func @kernel(%arg0: i32, %arg1: memref<8x128xf32, #tpu.memory_space<vmem>>, %arg2: memref<8x128xf32, #tpu.memory_space<vmem>>, %arg3: memref<1x1xf32, #tpu.memory_space<vmem>>) attributes {dimension_semantics = [#tpu.dimension_semantics<arbitrary>], iteration_bounds = array<i64: 1>, scalar_prefetch = 0 : i64, scratch_operands = 0 : i64, tpu.core_type = #tpu.core_type<tc>, window_params = [{pipeline_mode = #tpu.pipeline_mode<synchronous>, transform_indices = @transform_0, window_bounds = array<i64: 8, 128>}, {pipeline_mode = #tpu.pipeline_mode<synchronous>, transform_indices = @transform_1, window_bounds = array<i64: 8, 128>}, {pipeline_mode = #tpu.pipeline_mode<synchronous>, transform_indices = @transform_2, window_bounds = array<i64: 1, 1>}]} {
    %c0 = arith.constant 0 : index
    %c0_0 = arith.constant 0 : index
    %0 = vector.load %arg1[%c0, %c0_0] : memref<8x128xf32, #tpu.memory_space<vmem>>, vector<8x128xf32>
    %c0_1 = arith.constant 0 : index
    %c0_2 = arith.constant 0 : index
    %1 = vector.load %arg2[%c0_1, %c0_2] : memref<8x128xf32, #tpu.memory_space<vmem>>, vector<8x128xf32>
    %2 = arith.mulf %0, %0 : vector<8x128xf32>
    %3 = vector.shape_cast %2 : vector<8x128xf32> to vector<1x8x128xf32>
    %cst = arith.constant dense<0.000000e+00> : vector<1xf32>
    %4 = vector.multi_reduction <add>, %3, %cst [1, 2] : vector<1x8x128xf32> to vector<1xf32>
    %5 = vector.shape_cast %4 : vector<1xf32> to vector<1x1x1xf32>
    %6 = vector.extract %5[0, 0, 0] : f32 from vector<1x1x1xf32>
    %7 = vector.broadcast %6 : f32 to vector<1x1xf32>
    %8 = math.sqrt %7 : vector<1x1xf32>
    %cst_3 = arith.constant 9.99999996E-13 : f32
    %9 = vector.broadcast %cst_3 : f32 to vector<1x1xf32>
    %10 = arith.maximumf %8, %9 : vector<1x1xf32>
    %cst_4 = arith.constant 1.000000e+00 : f32
    %11 = vector.broadcast %cst_4 : f32 to vector<1x1xf32>
    %12 = arith.divf %11, %10 : vector<1x1xf32>
    %13 = vector.broadcast %12 : vector<1x1xf32> to vector<8x128xf32>
    %14 = arith.mulf %0, %13 : vector<8x128xf32>
    %15 = tpu.iota {dimensions = array<i32: 0>} : vector<8x128xi32>
    %16 = tpu.iota {dimensions = array<i32: 1>} : vector<8x128xi32>
    %c128_i32 = arith.constant 128 : i32
    %17 = vector.broadcast %c128_i32 : i32 to vector<8x128xi32>
    %18 = arith.muli %15, %17 : vector<8x128xi32>
    %19 = arith.addi %18, %16 : vector<8x128xi32>
    %c8_i32 = arith.constant 8 : i32
    %20 = vector.broadcast %c8_i32 : i32 to vector<8x128xi32>
    %21 = arith.cmpi slt, %19, %20 : vector<8x128xi32>
    %22 = arith.extui %21 : vector<8x128xi1> to vector<8x128xi32>
    %23 = arith.sitofp %22 : vector<8x128xi32> to vector<8x128xf32>
    %24 = math.exp %14 : vector<8x128xf32>
    %25 = arith.mulf %24, %23 : vector<8x128xf32>
    %26 = tpu.iota {dimensions = array<i32: 0>} : vector<128x128xi32>
    %27 = tpu.iota {dimensions = array<i32: 1>} : vector<128x128xi32>
    %28 = arith.cmpi sle, %26, %27 : vector<128x128xi32>
    %29 = arith.extui %28 : vector<128x128xi1> to vector<128x128xi32>
    %30 = arith.sitofp %29 : vector<128x128xi32> to vector<128x128xf32>
    %cst_5 = arith.constant dense<0.000000e+00> : vector<8x128xf32>
    %31 = tpu.matmul %25, %30, %cst_5 {dimension_numbers = #tpu.dot_dimension_numbers<[1], [0], [0], [1], [0, 0, 1, 1], [], []>} : vector<8x128xf32>, vector<128x128xf32>, vector<8x128xf32> -> vector<8x128xf32>
    %cst_6 = arith.constant dense<0.000000e+00> : vector<8xf32>
    %32 = vector.multi_reduction <add>, %25, %cst_6 [1] : vector<8x128xf32> to vector<8xf32>
    %33 = vector.shape_cast %32 : vector<8xf32> to vector<8x1xf32>
    %34 = tpu.iota {dimensions = array<i32: 0>} : vector<8x8xi32>
    %35 = tpu.iota {dimensions = array<i32: 1>} : vector<8x8xi32>
    %36 = arith.cmpi slt, %35, %34 : vector<8x8xi32>
    %37 = arith.extui %36 : vector<8x8xi1> to vector<8x8xi32>
    %38 = arith.sitofp %37 : vector<8x8xi32> to vector<8x8xf32>
    %cst_7 = arith.constant dense<0.000000e+00> : vector<8x1xf32>
    %39 = tpu.matmul %38, %33, %cst_7 {dimension_numbers = #tpu.dot_dimension_numbers<[1], [0], [0], [1], [0, 0, 1, 1], [], []>} : vector<8x8xf32>, vector<8x1xf32>, vector<8x1xf32> -> vector<8x1xf32>
    %40 = vector.broadcast %39 : vector<8x1xf32> to vector<8x128xf32>
    %41 = arith.addf %31, %40 : vector<8x128xf32>
    %42 = math.log %41 : vector<8x128xf32>
    %43 = arith.subf %14, %42 : vector<8x128xf32>
    %44 = arith.mulf %43, %1 : vector<8x128xf32>
    %45 = vector.shape_cast %44 : vector<8x128xf32> to vector<1x8x128xf32>
    %cst_8 = arith.constant dense<0.000000e+00> : vector<1xf32>
    %46 = vector.multi_reduction <add>, %45, %cst_8 [1, 2] : vector<1x8x128xf32> to vector<1xf32>
    %47 = vector.shape_cast %46 : vector<1xf32> to vector<1x1x1xf32>
    %48 = vector.extract %47[0, 0, 0] : f32 from vector<1x1x1xf32>
    %49 = vector.broadcast %48 : f32 to vector<1x1xf32>
    %cst_9 = arith.constant 0.000000e+00 : f32
    %50 = vector.broadcast %cst_9 : f32 to vector<8x128xf32>
    %51 = arith.cmpf one, %1, %50 : vector<8x128xf32>
    %52 = arith.extui %51 : vector<8x128xi1> to vector<8x128xi32>
    %53 = arith.sitofp %52 : vector<8x128xi32> to vector<8x128xf32>
    %54 = vector.shape_cast %53 : vector<8x128xf32> to vector<1x8x128xf32>
    %cst_10 = arith.constant dense<0.000000e+00> : vector<1xf32>
    %55 = vector.multi_reduction <add>, %54, %cst_10 [1, 2] : vector<1x8x128xf32> to vector<1xf32>
    %56 = vector.shape_cast %55 : vector<1xf32> to vector<1x1x1xf32>
    %57 = vector.extract %56[0, 0, 0] : f32 from vector<1x1x1xf32>
    %58 = vector.broadcast %57 : f32 to vector<1x1xf32>
    %59 = arith.divf %49, %58 : vector<1x1xf32>
    %cst_11 = arith.constant 0.000000e+00 : f32
    %60 = vector.broadcast %cst_11 : f32 to vector<1x1xf32>
    %61 = arith.subf %60, %59 : vector<1x1xf32>
    %c0_12 = arith.constant 0 : index
    %c0_13 = arith.constant 0 : index
    %62 = vector.load %arg3[%c0_12, %c0_13] : memref<1x1xf32, #tpu.memory_space<vmem>>, vector<1x1xf32>
    tpu.vector_store %arg3[%c0_12, %c0_13], %61 {strides = array<i32>} : memref<1x1xf32, #tpu.memory_space<vmem>>, vector<1x1xf32>,
    return
  }
  func.func @transform_0(%arg0: i32) -> (i32, i32) {
    %c0_i32 = arith.constant 0 : i32
    %c0_i32_0 = arith.constant 0 : i32
    %c0_i32_1 = arith.constant 0 : i32
    return %c0_i32, %c0_i32_0 : i32, i32
  }
  func.func @transform_1(%arg0: i32) -> (i32, i32) {
    %c0_i32 = arith.constant 0 : i32
    %c0_i32_0 = arith.constant 0 : i32
    %c0_i32_1 = arith.constant 0 : i32
    return %c0_i32, %c0_i32_0 : i32, i32
  }
  func.func @transform_2(%arg0: i32) -> (i32, i32) {
    %c0_i32 = arith.constant 0 : i32
    %c0_i32_0 = arith.constant 0 : i32
    %c0_i32_1 = arith.constant 0 : i32
    return %c0_i32, %c0_i32_0 : i32, i32
  }
}

</mosaic_0001>

<bundles_post_ra>
// kernel: coxph_loss_pallas.1
= control target key start
LH: loop header
LB: loop body
LE: loop exit
PB: predicated region body
PF: predicated region fallthrough
CT: control target
= control target key end

     0   :  { %s568_s0 = inlined_call_operand.vmem [shape: f32[8,128], index: 0, kind: input, shape index: {}]   ;;  %s569_s1 = inlined_call_operand.vmem [shape: f32[8,128], index: 1, kind: input, shape index: {}]   ;;  %s570_s2 = inlined_call_operand.hbm [shape: f32[1,1], index: 2, kind: output, shape index: {}]  }
   0x1   :  { %v502_v0 = vld [vmem:[%s568_s0] sm:$0xff] }
   0x2   :  { %7 = vsyncpa [#allocation3], 0  ;;  %v14_v1 = vmul.f32 %v502_v0, %v502_v0  ;;  %v36_v2 = vlaneseq  ;;  %v478_v6 = vmov 0.0|0.0   ;;  %v479_v7 = vmov 1.0|1.0   ;;  %v13_v52 = vld [vmem:[%s569_s1] sm:$0xff] }
   0x3   :  { %406 = vmatprep.subr.bf16.mxu1 %v478_v6  ;;  %vm480_vm14 = vmmov 0   ;;  %v481_v18 = vmov 0.0   ;;  %v482_v45 = vmov 0   ;;  %s483_s14 = smov [#allocation2]  }
   0x4   :  { %15 = vadd.xlane.f32.xlu0 %v14_v1  ;;  %v506_v3 = vshrl.u32 %v36_v2, 7  ;;  %v508_v4 = vand.u32 127, %v36_v2  ;;  %403 = vmatprep.mubr.msk.f32.mxu1 %vm480_vm14, %v481_v18  ;;  %s303_s15 = sshll.u32 %s483_s14, 4  ;;  %s304_s15 = int_to_ptr.vmem [resolvable:$true] %s303_s15 }
   0x5   :  { %366 = vmatprep.subr.mxu0 %v481_v18  ;;  %368 = vmatprep.mubr.msk.f32.mxu0 %vm480_vm14, %v481_v18  ;;  %vm279_vm14 = vcmp.ne.f32.partialorder %v13_v52, 0.0  ;;  %s454_s16 = scalar_lea.vmem %s304_s15, 16  ;;  %s458_s17 = scalar_lea.vmem %s304_s15, 32 }
   0x6   :  { %v48_v5 = vadd.s32 8, %v506_v3  ;;  %vm63_vm0 = vcmp.le.s32.totalorder %v506_v3, %v508_v4  ;;  %v49_v8 = vadd.s32 16, %v506_v3  ;;  %v50_v9 = vadd.s32 24, %v506_v3  ;;  %442 = vset.pattern.permute.xlu1 %v482_v45  ;;  %443 = vset.pattern.permute.xlu0 %v482_v45  ;;  %p455_p0 = scmp.ne.s32.totalorder %s304_s15, %s454_s16  ;;  %p459_p1 = scmp.lt.s32.totalorder %s304_s15, %s304_s15 }
   0x7   :  { %v51_v10 = vadd.s32 32, %v506_v3  ;;  %v52_v11 = vadd.s32 40, %v506_v3  ;;  %v53_v12 = vadd.s32 48, %v506_v3  ;;  %v54_v13 = vadd.s32 56, %v506_v3  ;;  %p460_p2 = scmp.lt.s32.totalorder %s458_s17, %s454_s16 }
   0x8   :  { %vm64_vm1 = vcmp.le.s32.totalorder %v48_v5, %v508_v4  ;;  %vm65_vm3 = vcmp.le.s32.totalorder %v49_v8, %v508_v4  ;;  %vm66_vm4 = vcmp.le.s32.totalorder %v50_v9, %v508_v4  ;;  %v55_v14 = vadd.s32 64, %v506_v3 }
   0x9   :  { %vm407_vm2 = vmpackc.low %vm64_vm1, %vm63_vm0  ;;  %vm67_vm6 = vcmp.le.s32.totalorder %v51_v10, %v508_v4  ;;  %vm68_vm7 = vcmp.le.s32.totalorder %v52_v11, %v508_v4  ;;  %vm69_vm9 = vcmp.le.s32.totalorder %v53_v12, %v508_v4  ;;  %vm70_vm10 = vcmp.le.s32.totalorder %v54_v13, %v508_v4  ;;  %p461_p3 = por %p460_p2, %p459_p1 }
   0xa   :  { %408 = vmatpush3.bf16.msk.msra.mxu1 %vm407_vm2, %v479_v7  ;;  %vm410_vm5 = vmpackc.low %vm66_vm4, %vm65_vm3  ;;  %v56_v15 = vadd.s32 72, %v506_v3  ;;  %vm71_vm12 = vcmp.le.s32.totalorder %v55_v14, %v508_v4  ;;  %v57_v16 = vadd.s32 80, %v506_v3  ;;  %v58_v17 = vadd.s32 88, %v506_v3 }
   0xb   :  { %409 = vmatprep.subr.bf16.mxu1 %v478_v6  ;;  %vm413_vm8 = vmpackc.low %vm68_vm7, %vm67_vm6  ;;  %v59_v19 = vadd.s32 96, %v506_v3  ;;  %v60_v20 = vadd.s32 104, %v506_v3  ;;  %v61_v21 = vadd.s32 112, %v506_v3  ;;  %v62_v22 = vadd.s32 120, %v506_v3  ;;  %p462_p4 = pnand %p461_p3, %p455_p0 }
   0xc   :  { %vm416_vm11 = vmpackc.low %vm70_vm10, %vm69_vm9  ;;  %vm72_vm13 = vcmp.le.s32.totalorder %v56_v15, %v508_v4  ;;  %vm73_vm0 = vcmp.le.s32.totalorder %v57_v16, %v508_v4  ;;  %vm74_vm1 = vcmp.le.s32.totalorder %v58_v17, %v508_v4  ;;  %v40_v39 = vmul.u32 128, %v506_v3 }
   0xd   :  { %vm419_vm15 = vmpackc.low %vm72_vm13, %vm71_vm12  ;;  %vm75_vm3 = vcmp.le.s32.totalorder %v59_v19, %v508_v4  ;;  %vm76_vm4 = vcmp.le.s32.totalorder %v60_v20, %v508_v4  ;;  %vm77_vm6 = vcmp.le.s32.totalorder %v61_v21, %v508_v4  ;;  %vm78_vm7 = vcmp.le.s32.totalorder %v62_v22, %v508_v4 }
   0xe   :  { %411 = vmatpush3.bf16.msk.msra.mxu1 %vm410_vm5, %v479_v7  ;;  %vm422_vm2 = vmpackc.low %vm74_vm1, %vm73_vm0  ;;  %v41_v41 = vadd.s32 %v40_v39, %v508_v4  ;;  %vm113_vm12 = vcmp.lt.s32.totalorder %v508_v4, %v506_v3  ;;  %vm116_vm13 = vcmask 64512   ;;  %v346_v53 = vsel %vm279_vm14, 1.0, %v481_v18 }
   0xf   :  { %412 = vmatprep.subr.bf16.mxu1 %v478_v6  ;;  %vm425_vm5 = vmpackc.low %vm76_vm4, %vm75_vm3  ;;  %v328_v46 = vsel %vm113_vm12, 1.0, %v481_v18 }
  0x12   :  { %414 = vmatpush3.bf16.msk.msra.mxu1 %vm413_vm8, %v479_v7  ;;  %vm428_vm8 = vmpackc.low %vm78_vm7, %vm77_vm6 }
  0x13   :  { %415 = vmatprep.subr.bf16.mxu1 %v478_v6 }
  0x16   :  { %417 = vmatpush3.bf16.msk.msra.mxu1 %vm416_vm11, %v479_v7  ;;  %vm42_vm11 = vcmp.lt.s32.totalorder %v41_v41, 8 }
  0x17   :  { %418 = vmatprep.subr.bf16.mxu1 %v478_v6  ;;  %v311_v42 = vsel %vm42_vm11, 1.0, %v481_v18 }
  0x1a   :  { %420 = vmatpush3.bf16.msk.msra.mxu1 %vm419_vm15, %v479_v7  ;;  %vm295_vm15 = vcmask 0  }
  0x1b   :  { %421 = vmatprep.subr.bf16.mxu1 %v478_v6 }
  0x1e   :  { %423 = vmatpush3.bf16.msk.msra.mxu1 %vm422_vm2, %v479_v7 }
  0x1f   :  { %424 = vmatprep.subr.bf16.mxu1 %v478_v6 }
  0x22   :  { %426 = vmatpush3.bf16.msk.msra.mxu1 %vm425_vm5, %v479_v7 }
  0x23   :  { %427 = vmatprep.subr.bf16.mxu1 %v478_v6 }
  0x26   :  { %429 = vmatpush3.bf16.msk.msra.mxu1 %vm428_vm8, %v479_v7 }
  0x91   :  { %v16_v23 = vpop.xlane.xlu0 %15 }
  0x92   :  { %v17_v24 = vrot.slane %v16_v23, 4 }
  0x94   :  { %v18_v25 = vadd.f32 %v17_v24, %v16_v23 }
  0x96   :  { %v19_v26 = vrot.slane %v18_v25, 2 }
  0x98   :  { %v20_v27 = vadd.f32 %v19_v26, %v18_v25 }
  0x9a   :  { %v21_v28 = vrot.slane %v20_v27, 1 }
  0x9c   :  { %v22_v29 = vadd.f32 %v21_v28, %v20_v27 }
  0x9e   :  { %430 = vpush %v22_v29 }
  0xcf   :  { %s431_s0 = spop %430 }
  0xd0   :  { %v24_v30 = vstv %s431_s0 }
  0xd1   :  { %444 = vrsqrt.f32 %v24_v30  ;;  %vm27_vm9 = vcmp.eq.f32.partialorder %v24_v30, inf  ;;  %v30_v33 = vand.u32 2147483648, %v24_v30  ;;  %vm29_vm10 = vcmp.eq.f32.partialorder %v24_v30, 0.0 }
  0xdb   :  { %v445_v31 = vpop.eup %444 }
  0xdc   :  { %v26_v32 = vmul.f32 %v445_v31, %v24_v30 }
  0xde   :  { %v28_v34 = vsel %vm27_vm9, %v24_v30, %v26_v32 }
  0xdf   :  { %v31_v35 = vsel %vm29_vm10, %v30_v33, %v28_v34 }
  0xe0   :  { %v32_v36 = vmax.f32 %v31_v35, 1e-12 }
  0xe2   :  { %446 = vrcp.f32 %v32_v36 }
  0xec   :  { %v447_v37 = vpop.eup %446 }
  0xed   :  { %v35_v38 = vmul.f32 %v447_v37, %v502_v0 }
  0xef   :  { %v45_v40 = vmul.f32 1.442695, %v35_v38 }
  0xf1   :  { %448 = vpow2.f32 %v45_v40 }
  0xfb   :  { %v449_v43 = vpop.eup %448 }
  0xfc   :  { %v47_v44 = vmul.f32 %v449_v43, %v311_v42 }
  0xfe   :  { %111 = vadd.xlane.f32.xlu0 %v47_v44  ;;  %404 = vmatmul.mubr.f32.vlgmr.msra.gmra.mrb[0].mxu1 %v47_v44 }
 0x102   :  { %282 = vadd.xlane.f32.xlu0 %v346_v53 }
 0x18b   :  { %v112_v47 = vpop.xlane.xlu0 %111 }
 0x18c   :  { %367 = vmatpush3.msra.mxu0 %v112_v47 }
 0x18d   :  { %369 = vmatmul.mubr.msk.f32.vlgmr.msra.gmra.mrb[0].mxu0 %vm116_vm13, %v328_v46 }
 0x18f   :  { %v283_v60 = vpop.xlane.xlu0 %282 }
 0x190   :  { %v284_v61 = vrot.slane %v283_v60, 4 }
 0x192   :  { %v285_v62 = vadd.f32 %v284_v61, %v283_v60 }
 0x194   :  { %v286_v63 = vrot.slane %v285_v62, 2 }
 0x196   :  { %v287_v3 = vadd.f32 %v286_v63, %v285_v62 }
 0x198   :  { %v288_v6 = vrot.slane %v287_v3, 1 }
 0x19a   :  { %v289_v9 = vadd.f32 %v288_v6, %v287_v3 }
 0x1d1   :  { %v261_v48 = vpop.f32.mrb[0].mxu1 }
 0x1d2   :  { %v405_v49 = vpop.f32.mrb[1].mxu1 }
 0x260   :  { %v186_v50 = vpop.f32.mrb[0].mxu0 }
 0x261   :  { %192 = vperm.xlu1 %442, %v186_v50   ;;  %v370_v51 = vpop.f32.mrb[1].mxu0 }
 0x2e0   :  { %v193_v54 = vpop.permute.xlu1 %192 }
 0x2e1   :  { %v262_v55 = vadd.f32 %v261_v48, %v193_v54 }
 0x2e3   :  { %450 = vlog2.f32 %v262_v55 }
 0x2ed   :  { %v451_v56 = vpop.eup %450 }
 0x2ee   :  { %v266_v57 = vmul.f32 0.6931472, %v451_v56 }
 0x2f0   :  { %v267_v58 = vsub.f32 %v35_v38, %v266_v57 }
 0x2f2   :  { %v268_v59 = vmul.f32 %v267_v58, %v13_v52 }
 0x2f4   :  { %269 = vadd.xlane.f32.xlu1 %v268_v59 }
 0x381   :  { %v270_v0 = vpop.xlane.xlu1 %269 }
 0x382   :  { %v271_v1 = vrot.slane %v270_v0, 4 }
 0x384   :  { %v272_v2 = vadd.f32 %v271_v1, %v270_v0 }
 0x386   :  { %v273_v4 = vrot.slane %v272_v2, 2 }
 0x388   :  { %v274_v5 = vadd.f32 %v273_v4, %v272_v2 }
 0x38a   :  { %v275_v7 = vrot.slane %v274_v5, 1 }
 0x38c   :  { %v276_v8 = vadd.f32 %v275_v7, %v274_v5 }
 0x38e   :  { %432 = vpush %v276_v8 }
 0x38f   :  { %434 = vpush %v289_v9 }
 0x3bf   :  { %s433_s1 = spop %432 }
 0x3c0   :  { %s435_s13 = spop %434  ;;  %v278_v12 = vstv %s433_s1 }
 0x3c1   :  { %v291_v10 = vstv %s435_s13 }
 0x3c2   :  { %452 = vrcp.f32 %v291_v10 }
 0x3cc   :  { %v453_v11 = vpop.eup %452 }
 0x3cd   :  { %v293_v13 = vmul.f32 %v453_v11, %v278_v12 }
 0x3cf   :  { %v294_v14 = vsub.f32 0.0, %v293_v13 }
 0x3d1   :  { %296 = vst.msk [vmem:[#allocation2] sm:$0x1] %vm295_vm15, %v294_v14 }
 0x3d2   :  { %465 = shalt.err (!%p462_p4)
}
 0x3d3   :  { %s466_s20 = scalar_lea.hbm %s570_s2, 16 }
 0x3d4   :  { %p467_p5 = scmp.ne.s32.totalorder %s570_s2, %s466_s20  ;;  %p470_p6 = scmp.lt.u32.totalorder %s466_s20, %s570_s2 }
 0x3d6   :  { %p472_p7 = pnand %p470_p6, %p467_p5 }
 0x3d8   :  { %475 = shalt.err (!%p472_p7)
}
 0x3d9   :  { %306 = dma.vmem_to_hbm [thread:$0]  %s304_s15, 16, %s570_s2, [#allocation3]  }
 0x3da   :  { %476 = dma.done.wait [#allocation3], 16  }
 0x3db   :  { %477 = vsyncadd [#allocation3], 4294967280 }
 0x3dc   :  { %310 = vsyncpa [#allocation3], 1 }

</bundles_post_ra>
